<compile_context>
chip_gen: v6e
topology: v6e:2x2x1
jax: 0.10.0
libtpu: 0.0.40
codegen_flags: <defaults>
</compile_context>

<pallas_src>
import jax
import jax.numpy as jnp
from jax.experimental import pallas as pl
from jax.experimental.pallas import tpu as pltpu

_LANE = 128
_SUBLANE = 8


def _vmem_capacity_bytes() -> int:
    """Per-TensorCore VMEM capacity; conservative (v7x) fallback."""
    try:
        info = pltpu.get_tpu_info()
        cap = int(getattr(info, "vmem_capacity_bytes", 0) or 0)
        if cap > 0:
            return cap
    except Exception:
        pass
    return 64 * 1024 * 1024


def _per_row_bytes(n_classes: int, itemsize: int, n_buf: int) -> int:
    # Per batch-row VMEM footprint used for tile sizing / vmem_limit:
    #   * n_buf pipelined preds tile buffers in the input dtype,
    #   * ~2 f32 elements/row of headroom for fused-pass intermediates
    #     (the exp-chain live pair that Mosaic may materialize),
    #   * labels (tile_n, 1) int32 lane-padded to 128 lanes -> 512 B/row,
    #     double-buffered (review item: labels accounting fix).
    return (n_buf * n_classes * itemsize
            + 8 * n_classes
            + 2 * _LANE * 4)


def _pick_tile_n(n_rows: int, n_classes: int, itemsize: int, budget: int) -> int:
    tile = int(budget // _per_row_bytes(n_classes, itemsize, n_buf=2))
    if tile >= n_rows:
        return n_rows
    return max(_SUBLANE, (tile // _SUBLANE) * _SUBLANE)


def _preds_block_spec(tile_n, n_classes, index_map, n_buf):
    """preds BlockSpec; request deeper pipelining when tiles are small."""
    if n_buf > 2 and hasattr(pl, "Buffered"):
        try:
            return pl.BlockSpec((tile_n, n_classes), index_map,
                                pipeline_mode=pl.Buffered(n_buf))
        except TypeError:       # older jax without pipeline_mode / Buffered
            pass
    return pl.BlockSpec((tile_n, n_classes), index_map)


def _make_kernel(c_smooth: float, c_nll: float, n_rows: int, n_classes: int,
                 tile_n: int, tiles_per_stripe: int, needs_mask: bool):

    def ls_ce_kernel(preds_ref, labels_ref, out_ref):
        s = pl.program_id(0)      # stripe (parallel; split across TCs on v7x)
        k = pl.program_id(1)      # tile within stripe (reduction axis)

        @pl.when(k == 0)
        def _():
            out_ref[...] = jnp.zeros(out_ref.shape, jnp.float32)

        labels = labels_ref[...]                       # (tile_n, 1) int32

        # Pass 1: row max in the input dtype (exact for max); widen only the
        # (tile_n, 1) result.
        m32 = jnp.max(preds_ref[...], axis=-1, keepdims=True).astype(jnp.float32)

        # Pass 2: row sum of the raw logits with f32 accumulation (no stored
        # whole-tile f32 copy).
        sum_x = jnp.sum(preds_ref[...], axis=-1, keepdims=True,
                        dtype=jnp.float32)

        # Pass 3: x[label] via one-hot select in the input dtype (a single
        # non-zero term per row, so f32 accumulation is exact).
        xsel = preds_ref[...]
        col = jax.lax.broadcasted_iota(jnp.int32, xsel.shape, 1)
        picked = jnp.sum(jnp.where(col == labels, xsel, jnp.zeros_like(xsel)),
                         axis=-1, keepdims=True, dtype=jnp.float32)

        # Pass 4: the only whole-tile f32 math -- exp fused into its reduction.
        sum_exp = jnp.sum(jnp.exp(preds_ref[...].astype(jnp.float32) - m32),
                          axis=-1, keepdims=True)
        lse = m32 + jnp.log(sum_exp)                   # (tile_n, 1) f32

        #  -sum_c log_softmax   = C*lse - sum_c(x)
        #  -log_softmax[label]  =   lse - x[label]
        row_neg_sum = n_classes * lse - sum_x
        row_neg_nll = lse - picked

        if needs_mask:
            # Mask rows past N (ragged last tile and the clamped duplicate
            # tile of an uneven stripe split) using the *logical* tile index.
            tile_idx = s * tiles_per_stripe + k
            row_ids = tile_idx * tile_n + jax.lax.broadcasted_iota(
                jnp.int32, (tile_n, 1), 0)
            valid = row_ids < n_rows
            row_neg_sum = jnp.where(valid, row_neg_sum, 0.0)
            row_neg_nll = jnp.where(valid, row_neg_nll, 0.0)

        tile_total = (c_smooth * jnp.sum(row_neg_sum)
                      + c_nll * jnp.sum(row_neg_nll))
        # One vreg-wide add/store; wrapper reads element [0, 0] of each stripe.
        out_ref[...] += jnp.broadcast_to(tile_total, out_ref.shape)

    return ls_ce_kernel


def label_smoothing_cross_entropy(preds, target, epsilon: float = 0.1,
                                  reduction: str = "mean", tile_n: int = None):
    """preds: (N, C) float (any dtype), target: (N,) int -> scalar f32 loss."""
    assert reduction in ("mean", "sum"), "reduction='none' not supported"
    n_rows, n_classes = preds.shape
    labels = target.astype(jnp.int32).reshape(n_rows, 1)
    itemsize = jnp.dtype(preds.dtype).itemsize

    vmem_cap = _vmem_capacity_bytes()
    budget = min(vmem_cap // 2, 64 * 1024 * 1024)   # 32 MiB on v7x, 64 on v5e/v6e

    if tile_n is None:
        tile_n = _pick_tile_n(n_rows, n_classes, itemsize, budget)
    else:
        tile_n = int(tile_n)
        assert tile_n == n_rows or (tile_n % _SUBLANE == 0 and tile_n <= n_rows), (
            "tile_n must equal N or be a multiple of 8 and <= N")

    n_tiles = pl.cdiv(n_rows, tile_n)
    n_stripes = 2 if n_tiles >= 2 else 1            # v7x: one stripe per TensorCore
    tiles_per_stripe = pl.cdiv(n_tiles, n_stripes)
    needs_mask = (n_stripes * tiles_per_stripe * tile_n) != n_rows

    tile_bytes = tile_n * n_classes * itemsize
    # Third preds buffer only when tiles are small (cheap) and the per-stripe
    # trip count is long enough for the deeper DMA queue to matter.
    n_buf = 3 if (tiles_per_stripe >= 3 and tile_bytes <= 4 * 1024 * 1024) else 2

    denom = float(n_rows) if reduction == "mean" else 1.0
    c_smooth = float(epsilon) / (denom * n_classes)
    c_nll = (1.0 - float(epsilon)) / denom

    def tile_map(s, k):
        # Clamp so an uneven stripe split never issues a fully out-of-bounds
        # block DMA; the duplicate tile's rows are masked out in-kernel.
        return (jnp.minimum(s * tiles_per_stripe + k, n_tiles - 1), 0)

    need = (tile_n * _per_row_bytes(n_classes, itemsize, n_buf)
            + n_stripes * _SUBLANE * _LANE * 4          # resident partial blocks
            + (1 << 20))                                # slack / internal scratch
    vmem_limit = int(min(max(2 * need, 16 * 1024 * 1024), (vmem_cap * 3) // 4))

    out = pl.pallas_call(
        _make_kernel(c_smooth, c_nll, n_rows, n_classes, tile_n,
                     tiles_per_stripe, needs_mask),
        out_shape=jax.ShapeDtypeStruct((n_stripes * _SUBLANE, _LANE), jnp.float32),
        grid_spec=pltpu.PrefetchScalarGridSpec(
            num_scalar_prefetch=0,
            grid=(n_stripes, tiles_per_stripe),
            in_specs=[
                _preds_block_spec(tile_n, n_classes, tile_map, n_buf),  # preds
                pl.BlockSpec((tile_n, 1), tile_map),                    # labels
            ],
            out_specs=pl.BlockSpec((_SUBLANE, _LANE), lambda s, k: (s, 0)),
        ),
        compiler_params=pltpu.CompilerParams(
            # Stripe axis parallel -> 2-TensorCore split on v7x (harmless
            # 2-long outer loop on v5e/v6e); tile axis is the reduction with
            # the resident accumulator, so it stays arbitrary.
            dimension_semantics=("parallel", "arbitrary"),
            vmem_limit_bytes=vmem_limit,
        ),
    )(preds, labels)

    # Every element of a stripe's (8,128) block holds that stripe's partial.
    partials = out.reshape(n_stripes, _SUBLANE, _LANE)[:, 0, 0]
    return jnp.sum(partials)


def _reference(preds, target, epsilon=0.1, reduction="mean"):
    logp = jax.nn.log_softmax(preds.astype(jnp.float32), axis=-1)
    n = preds.shape[-1]
    red = jnp.mean if reduction == "mean" else jnp.sum
    smooth = red(-jnp.sum(logp, axis=-1))
    nll = red(-jnp.take_along_axis(
        logp, target.astype(jnp.int32)[:, None], axis=-1)[:, 0])
    return epsilon * smooth / n + (1.0 - epsilon) * nll


if __name__ == "__main__":
    key = jax.random.PRNGKey(0)
    kp, kt = jax.random.split(key)

    # Case 1: small single-tile (N=8, C=32), f32, mean reduction.
    N, C = 8, 32
    preds = jax.random.normal(kp, (N, C), dtype=jnp.float32)
    target = jax.random.randint(kt, (N,), 0, C, dtype=jnp.int32)
    loss = jax.block_until_ready(
        label_smoothing_cross_entropy(preds, target, epsilon=0.1))
    ref = _reference(preds, target, epsilon=0.1)
    assert jnp.allclose(loss, ref, rtol=1e-5, atol=1e-5), (loss, ref)

    # Case 1b: same data, sum reduction.
    loss_s = jax.block_until_ready(
        label_smoothing_cross_entropy(preds, target, epsilon=0.1, reduction="sum"))
    ref_s = _reference(preds, target, epsilon=0.1, reduction="sum")
    assert jnp.allclose(loss_s, ref_s, rtol=1e-5, atol=1e-5), (loss_s, ref_s)

    # Case 2: bf16, multi-tile, 2 stripes with ragged/clamped tiles
    # (N=20, tile_n=8) -- exercises stripes, masking, in-pass f32 widening.
    kp2, kt2 = jax.random.split(kt)
    N2, C2 = 20, 128
    preds2 = jax.random.normal(kp2, (N2, C2), dtype=jnp.bfloat16)
    target2 = jax.random.randint(kt2, (N2,), 0, C2, dtype=jnp.int32)
    loss2 = jax.block_until_ready(
        label_smoothing_cross_entropy(preds2, target2, epsilon=0.1, tile_n=8))
    ref2 = _reference(preds2, target2, epsilon=0.1)
    assert jnp.allclose(loss2, ref2, rtol=1e-3, atol=1e-3), (loss2, ref2)

    # Case 3: f32, 7 tiles over 2 stripes (N=50, tile_n=8) -- exercises the
    # Buffered(3) preds pipeline, the clamped duplicate tile, and masking.
    kp3, kt3 = jax.random.split(kt2)
    N3, C3 = 50, 256
    preds3 = jax.random.normal(kp3, (N3, C3), dtype=jnp.float32)
    target3 = jax.random.randint(kt3, (N3,), 0, C3, dtype=jnp.int32)
    loss3 = jax.block_until_ready(
        label_smoothing_cross_entropy(preds3, target3, epsilon=0.1, tile_n=8))
    ref3 = _reference(preds3, target3, epsilon=0.1)
    assert jnp.allclose(loss3, ref3, rtol=1e-5, atol=1e-5), (loss3, ref3)

    print("KERNEL_OK")
</pallas_src>

<mosaic_0001>
module attributes {stable_mosaic.version = 11 : i64} {
  func.func @ls_ce_kernel(%arg0: i32, %arg1: i32, %arg2: memref<8x32xf32, #tpu.memory_space<vmem>>, %arg3: memref<8x1xi32, #tpu.memory_space<vmem>>, %arg4: memref<8x128xf32, #tpu.memory_space<vmem>>) attributes {dimension_semantics = [#tpu.dimension_semantics<parallel>, #tpu.dimension_semantics<arbitrary>], iteration_bounds = array<i64: 1, 1>, scalar_prefetch = 0 : i64, scratch_operands = 0 : i64, tpu.core_type = #tpu.core_type<tc>, window_params = [{transform_indices = @transform_0, window_bounds = array<i64: 8, 32>}, {transform_indices = @transform_1, window_bounds = array<i64: 8, 1>}, {transform_indices = @transform_2, window_bounds = array<i64: 8, 128>}]} {
    %c0_i32 = arith.constant 0 : i32
    %0 = arith.cmpi eq, %arg1, %c0_i32 : i32
    %1 = arith.extui %0 : i1 to i32
    %c0_i32_0 = arith.constant 0 : i32
    %2 = arith.cmpi ne, %1, %c0_i32_0 : i32
    scf.if %2 {
      %cst_23 = arith.constant 0.000000e+00 : f32
      %45 = vector.broadcast %cst_23 : f32 to vector<8x128xf32>
      %c0_24 = arith.constant 0 : index
      %c0_25 = arith.constant 0 : index
      %46 = vector.load %arg4[%c0_24, %c0_25] : memref<8x128xf32, #tpu.memory_space<vmem>>, vector<8x128xf32>
      tpu.vector_store %arg4[%c0_24, %c0_25], %45 {strides = array<i32>} : memref<8x128xf32, #tpu.memory_space<vmem>>, vector<8x128xf32>,
    } else {
    }
    %c0 = arith.constant 0 : index
    %c0_1 = arith.constant 0 : index
    %3 = vector.load %arg3[%c0, %c0_1] : memref<8x1xi32, #tpu.memory_space<vmem>>, vector<8x1xi32>
    %c0_2 = arith.constant 0 : index
    %c0_3 = arith.constant 0 : index
    %4 = vector.load %arg2[%c0_2, %c0_3] : memref<8x32xf32, #tpu.memory_space<vmem>>, vector<8x32xf32>
    %cst = arith.constant dense<0xFF800000> : vector<8xf32>
    %5 = vector.multi_reduction <maximumf>, %4, %cst [1] : vector<8x32xf32> to vector<8xf32>
    %6 = vector.shape_cast %5 : vector<8xf32> to vector<8x1xf32>
    %c0_4 = arith.constant 0 : index
    %c0_5 = arith.constant 0 : index
    %7 = vector.load %arg2[%c0_4, %c0_5] : memref<8x32xf32, #tpu.memory_space<vmem>>, vector<8x32xf32>
    %cst_6 = arith.constant dense<0.000000e+00> : vector<8xf32>
    %8 = vector.multi_reduction <add>, %7, %cst_6 [1] : vector<8x32xf32> to vector<8xf32>
    %9 = vector.shape_cast %8 : vector<8xf32> to vector<8x1xf32>
    %c0_7 = arith.constant 0 : index
    %c0_8 = arith.constant 0 : index
    %10 = vector.load %arg2[%c0_7, %c0_8] : memref<8x32xf32, #tpu.memory_space<vmem>>, vector<8x32xf32>
    %11 = tpu.iota {dimensions = array<i32: 1>} : vector<8x32xi32>
    %12 = vector.broadcast %3 : vector<8x1xi32> to vector<8x32xi32>
    %13 = arith.cmpi eq, %11, %12 : vector<8x32xi32>
    %cst_9 = arith.constant 0.000000e+00 : f32
    %14 = vector.broadcast %cst_9 : f32 to vector<8x32xf32>
    %15 = arith.select %13, %10, %14 : vector<8x32xi1>, vector<8x32xf32>
    %cst_10 = arith.constant dense<0.000000e+00> : vector<8xf32>
    %16 = vector.multi_reduction <add>, %15, %cst_10 [1] : vector<8x32xf32> to vector<8xf32>
    %17 = vector.shape_cast %16 : vector<8xf32> to vector<8x1xf32>
    %c0_11 = arith.constant 0 : index
    %c0_12 = arith.constant 0 : index
    %18 = vector.load %arg2[%c0_11, %c0_12] : memref<8x32xf32, #tpu.memory_space<vmem>>, vector<8x32xf32>
    %19 = vector.broadcast %6 : vector<8x1xf32> to vector<8x32xf32>
    %20 = arith.subf %18, %19 : vector<8x32xf32>
    %21 = math.exp %20 : vector<8x32xf32>
    %cst_13 = arith.constant dense<0.000000e+00> : vector<8xf32>
    %22 = vector.multi_reduction <add>, %21, %cst_13 [1] : vector<8x32xf32> to vector<8xf32>
    %23 = vector.shape_cast %22 : vector<8xf32> to vector<8x1xf32>
    %24 = math.log %23 : vector<8x1xf32>
    %25 = arith.addf %6, %24 : vector<8x1xf32>
    %cst_14 = arith.constant 3.200000e+01 : f32
    %26 = vector.broadcast %cst_14 : f32 to vector<8x1xf32>
    %27 = arith.mulf %26, %25 : vector<8x1xf32>
    %28 = arith.subf %27, %9 : vector<8x1xf32>
    %29 = arith.subf %25, %17 : vector<8x1xf32>
    %30 = vector.shape_cast %28 : vector<8x1xf32> to vector<1x8x1xf32>
    %cst_15 = arith.constant dense<0.000000e+00> : vector<1xf32>
    %31 = vector.multi_reduction <add>, %30, %cst_15 [1, 2] : vector<1x8x1xf32> to vector<1xf32>
    %32 = vector.shape_cast %31 : vector<1xf32> to vector<1x1x1xf32>
    %33 = vector.extract %32[0, 0, 0] : f32 from vector<1x1x1xf32>
    %cst_16 = arith.constant 3.906250e-04 : f32
    %34 = arith.mulf %cst_16, %33 : f32
    %35 = vector.shape_cast %29 : vector<8x1xf32> to vector<1x8x1xf32>
    %cst_17 = arith.constant dense<0.000000e+00> : vector<1xf32>
    %36 = vector.multi_reduction <add>, %35, %cst_17 [1, 2] : vector<1x8x1xf32> to vector<1xf32>
    %37 = vector.shape_cast %36 : vector<1xf32> to vector<1x1x1xf32>
    %38 = vector.extract %37[0, 0, 0] : f32 from vector<1x1x1xf32>
    %cst_18 = arith.constant 1.125000e-01 : f32
    %39 = arith.mulf %cst_18, %38 : f32
    %40 = arith.addf %34, %39 : f32
    %c0_19 = arith.constant 0 : index
    %c0_20 = arith.constant 0 : index
    %41 = vector.load %arg4[%c0_19, %c0_20] : memref<8x128xf32, #tpu.memory_space<vmem>>, vector<8x128xf32>
    %42 = vector.broadcast %40 : f32 to vector<8x128xf32>
    %43 = arith.addf %41, %42 : vector<8x128xf32>
    %c0_21 = arith.constant 0 : index
    %c0_22 = arith.constant 0 : index
    %44 = vector.load %arg4[%c0_21, %c0_22] : memref<8x128xf32, #tpu.memory_space<vmem>>, vector<8x128xf32>
    tpu.vector_store %arg4[%c0_21, %c0_22], %43 {strides = array<i32>} : memref<8x128xf32, #tpu.memory_space<vmem>>, vector<8x128xf32>,
    return
  }
  func.func @transform_0(%arg0: i32, %arg1: i32) -> (i32, i32) {
    %c1_i32 = arith.constant 1 : i32
    %0 = arith.muli %arg0, %c1_i32 : i32
    %1 = arith.addi %0, %arg1 : i32
    %c0_i32 = arith.constant 0 : i32
    %2 = arith.minsi %1, %c0_i32 : i32
    %c0_i32_0 = arith.constant 0 : i32
    %c0_i32_1 = arith.constant 0 : i32
    return %2, %c0_i32_0 : i32, i32
  }
  func.func @transform_1(%arg0: i32, %arg1: i32) -> (i32, i32) {
    %c1_i32 = arith.constant 1 : i32
    %0 = arith.muli %arg0, %c1_i32 : i32
    %1 = arith.addi %0, %arg1 : i32
    %c0_i32 = arith.constant 0 : i32
    %2 = arith.minsi %1, %c0_i32 : i32
    %c0_i32_0 = arith.constant 0 : i32
    %c0_i32_1 = arith.constant 0 : i32
    return %2, %c0_i32_0 : i32, i32
  }
  func.func @transform_2(%arg0: i32, %arg1: i32) -> (i32, i32) {
    %c0_i32 = arith.constant 0 : i32
    %c0_i32_0 = arith.constant 0 : i32
    return %arg0, %c0_i32 : i32, i32
  }
}

</mosaic_0001>

<bundles_post_ra>
// kernel: tpu_custom_call.1
= control target key start
LH: loop header
LB: loop body
LE: loop exit
PB: predicated region body
PF: predicated region fallthrough
CT: control target
= control target key end

     0   :  { %vm73_vm0 = vcmask 261120   ;;  %s220_s0 = inlined_call_operand.vmem [shape: f32[8,32], index: 0, kind: input, shape index: {}]   ;;  %s221_s1 = inlined_call_operand.vmem [shape: s32[8,1], index: 1, kind: input, shape index: {}]   ;;  %s222_s2 = inlined_call_operand.hbm [shape: f32[8,128], index: 2, kind: output, shape index: {}]  }
   0x1   :  { %v72_v0 = vld [vmem:[%s220_s0] sm:$0xff] }
   0x2   :  { %7 = vsyncpa [#allocation3], 0  ;;  %v74_v1 = vsel %vm73_vm0, %v72_v0, -inf  ;;  %v190_v2 = vmov 0   ;;  %v71_v3 = vld [vmem:[%s221_s1] sm:$0xff]  ;;  %v80_v7 = vlaneseq  ;;  %v77_v12 = vsel %vm73_vm0, %v72_v0, 0.0 }
   0x3   :  { %163 = vset.pattern.permute.xlu0 %v190_v2  ;;  %vm102_vm2 = vcmask 7168   ;;  %s191_s16 = smov [#allocation2]  }
   0x4   :  { %75 = vmax.xlane.f32.xlu0 %v74_v1  ;;  %v81_v8 = vand.u32 127, %v80_v7  ;;  %s136_s17 = sshll.u32 %s191_s16, 4  ;;  %s137_s17 = int_to_ptr.vmem [resolvable:$true] %s136_s17 }
   0x5   :  { %s168_s18 = scalar_lea.vmem %s137_s17, 128  ;;  %p173_p1 = scmp.lt.s32.totalorder %s137_s17, %s137_s17 }
   0x6   :  { %p169_p0 = scmp.ne.s32.totalorder %s137_s17, %s168_s18  ;;  %p174_p2 = scmp.lt.s32.totalorder %s168_s18, %s168_s18 }
   0x8   :  { %p175_p3 = por %p174_p2, %p173_p1 }
   0xa   :  { %p176_p4 = pnand %p175_p3, %p169_p0 }
  0x1a   :  { %83 = vperm.xlu0 %163, %v71_v3  }
  0x8d   :  { %v76_v4 = vpop.xlane.xlu0 %75 }
  0x8e   :  { %v90_v5 = vsub.f32 %v72_v0, %v76_v4 }
  0x90   :  { %v91_v6 = vmul.f32 1.442695, %v90_v5 }
  0x92   :  { %164 = vpow2.f32 %v91_v6 }
  0x95   :  { %v84_v9 = vpop.permute.xlu0 %83 }
  0x96   :  { %vm85_vm1 = vcmp.eq.s32.totalorder %v81_v8, %v84_v9 }
  0x97   :  { %v86_v13 = vsel %vm85_vm1, %v72_v0, 0.0 }
  0x98   :  { %v87_v14 = vsel %vm73_vm0, %v86_v13, 0.0 }
  0x9f   :  { %v165_v10 = vpop.eup %164 }
  0xa0   :  { %v93_v11 = vsel %vm73_vm0, %v165_v10, 0.0 }
  0xa1   :  { %94 = vadd.xlane.f32.xlu1 %v93_v11 }
  0xa5   :  { %78 = vadd.xlane.f32.xlu1 %v77_v12 }
  0xa9   :  { %88 = vadd.xlane.f32.xlu1 %v87_v14 }
 0x12a   :  { %v95_v15 = vpop.xlane.xlu1 %94 }
 0x12b   :  { %166 = vlog2.f32 %v95_v15 }
 0x12e   :  { %v79_v17 = vpop.xlane.xlu1 %78 }
 0x132   :  { %v89_v21 = vpop.xlane.xlu1 %88 }
 0x138   :  { %v167_v16 = vpop.eup %166 }
 0x139   :  { %v97_v18 = vmul.f32 0.6931472, %v167_v16 }
 0x13b   :  { %v98_v19 = vadd.f32 %v97_v18, %v76_v4 }
 0x13d   :  { %v99_v20 = vmul.f32 32.0, %v98_v19  ;;  %v101_v23 = vsub.f32 %v98_v19, %v89_v21 }
 0x13f   :  { %v100_v22 = vsub.f32 %v99_v20, %v79_v17  ;;  %v114_v25 = vsel %vm102_vm2, %v101_v23, 0.0 }
 0x141   :  { %v103_v24 = vsel %vm102_vm2, %v100_v22, 0.0 }
 0x142   :  { %104 = vadd.xlane.f32.xlu1 %v103_v24 }
 0x146   :  { %115 = vadd.xlane.f32.xlu1 %v114_v25 }
 0x1cb   :  { %v105_v26 = vpop.xlane.xlu1 %104 }
 0x1cc   :  { %v106_v27 = vrot.slane %v105_v26, 4 }
 0x1ce   :  { %v107_v28 = vadd.f32 %v106_v27, %v105_v26 }
 0x1cf   :  { %v116_v29 = vpop.xlane.xlu1 %115 }
 0x1d0   :  { %v108_v30 = vrot.slane %v107_v28, 2  ;;  %v117_v31 = vrot.slane %v116_v29, 4 }
 0x1d2   :  { %v118_v32 = vadd.f32 %v117_v31, %v116_v29  ;;  %v109_v33 = vadd.f32 %v108_v30, %v107_v28 }
 0x1d4   :  { %v119_v34 = vrot.slane %v118_v32, 2  ;;  %v110_v35 = vrot.slane %v109_v33, 1 }
 0x1d6   :  { %v120_v36 = vadd.f32 %v119_v34, %v118_v32  ;;  %v111_v37 = vadd.f32 %v110_v35, %v109_v33 }
 0x1d8   :  { %156 = vpush %v111_v37  ;;  %v121_v38 = vrot.slane %v120_v36, 1 }
 0x1da   :  { %v122_v39 = vadd.f32 %v121_v38, %v120_v36 }
 0x1dc   :  { %158 = vpush %v122_v39 }
 0x209   :  { %s157_s0 = spop %156 }
 0x20a   :  { %s113_s1 = smul.f32 0.000390625, %s157_s0 }
 0x20d   :  { %s159_s13 = spop %158 }
 0x20e   :  { %s124_s14 = smul.f32 0.1125, %s159_s13 }
 0x210   :  { %s125_s15 = sadd.f32 %s124_s14, %s113_s1 }
 0x212   :  { %v127_v40 = vstv %s125_s15 }
 0x213   :  { %129 = vst [vmem:[#allocation2] sm:$0xff] %v127_v40 }
 0x214   :  { %179 = shalt.err (!%p176_p4)
}
 0x215   :  { %139 = dma.vmem_to_hbm [thread:$0]  %s137_s17, 128, %s222_s2, [#allocation3]  }
 0x216   :  { %188 = dma.done.wait [#allocation3], 128  }
 0x217   :  { %189 = vsyncadd [#allocation3], 4294967168 }
 0x218   :  { %143 = vsyncpa [#allocation3], 1 }

</bundles_post_ra>
